<compile_context>
chip_gen: v7x
topology: tpu7x:2x2x1
jax: 0.10.0
libtpu: 0.0.40
codegen_flags: <defaults>
</compile_context>

<pallas_src>
import jax
import jax.numpy as jnp
from jax.experimental import pallas as pl
from jax.experimental.pallas import tpu as pltpu

LANES = 128                      # vreg lane width
SMALL_BYTES = 512 * 1024         # no-grid fast-path threshold


def _my_activation_kernel(x_ref, o_ref):
    x = x_ref[...]
    # bf16/f32 compute natively; everything else upcasts to f32.
    if x.dtype == jnp.float32 or x.dtype == jnp.bfloat16:
        xf = x
    else:
        xf = x.astype(jnp.float32)
    sq = xf * xf
    low = xf - 0.5 * sq            # x < 0
    high = 0.125 * sq + 0.5        # x > 1
    y = jnp.where(xf < 0.0, low, jnp.where(xf > 1.0, high, xf))
    o_ref[...] = y.astype(o_ref.dtype)


def _cost_estimate(n, itemsize):
    # Pure bandwidth op: read n elements, write n elements, ~5 VPU flops/elem.
    return pl.CostEstimate(
        flops=5 * n, transcendentals=0, bytes_accessed=2 * n * itemsize)


def my_activation(x, *, row_tile=4096):
    """Pallas implementation of MyActivation.forward for any input shape."""
    orig_shape = x.shape
    orig_dtype = x.dtype
    n = x.size
    itemsize = jnp.dtype(orig_dtype).itemsize

    # Lane-dense packing: view the flat array as (rows, 128). Pad only when
    # n is not a multiple of 128 (zero padding maps to zero through the op).
    flat = jnp.ravel(x)
    padded = pl.cdiv(n, LANES) * LANES
    if padded != n:
        flat = jnp.pad(flat, (0, padded - n))
    rows = padded // LANES
    x2d = flat.reshape(rows, LANES)

    cost = _cost_estimate(n, itemsize)

    if rows * LANES * itemsize <= SMALL_BYTES:
        # Genuinely small input: single VMEM-resident block, no grid/pipeline.
        y2d = pl.pallas_call(
            _my_activation_kernel,
            out_shape=jax.ShapeDtypeStruct((rows, LANES), orig_dtype),
            in_specs=[pl.BlockSpec(memory_space=pltpu.MemorySpace.VMEM)],
            out_specs=pl.BlockSpec(memory_space=pltpu.MemorySpace.VMEM),
            cost_estimate=cost,
        )(x2d)
    else:
        # Tiled row axis, "parallel" so both v7x TensorCores split the work.
        # No row padding: pl.cdiv grid + clipped writes handle the ragged
        # final block (elementwise op, so OOB reads never reach a real write).
        y2d = pl.pallas_call(
            _my_activation_kernel,
            out_shape=jax.ShapeDtypeStruct((rows, LANES), orig_dtype),
            grid=(pl.cdiv(rows, row_tile),),
            in_specs=[pl.BlockSpec((row_tile, LANES), lambda i: (i, 0))],
            out_specs=pl.BlockSpec((row_tile, LANES), lambda i: (i, 0)),
            compiler_params=pltpu.CompilerParams(
                dimension_semantics=("parallel",)),
            cost_estimate=cost,
        )(x2d)

    y_flat = y2d.reshape(-1)
    if padded != n:
        y_flat = y_flat[:n]
    return y_flat.reshape(orig_shape)


def _reference(x):
    return jnp.where(
        x < 0.0,
        x - 0.5 * jnp.square(x),
        jnp.where(x > 1.0, 0.5 * jnp.square(0.5 * x) + 0.5, x),
    )


if __name__ == "__main__":
    key = jax.random.PRNGKey(0)
    # Small shape consistent with an activation module; scale so all three
    # regions (x<0, 0<=x<=1, x>1) are exercised.
    x = 2.0 * jax.random.normal(key, (2, 4, 16, 16), dtype=jnp.float32)

    out = jax.block_until_ready(my_activation(x))
    ref = _reference(x)
    assert out.shape == x.shape
    assert out.dtype == x.dtype
    assert jnp.allclose(out, ref, atol=1e-6, rtol=1e-6)

    # Ragged size (not a multiple of 128) to exercise the padding/slice path.
    x2 = 2.0 * jax.random.normal(jax.random.PRNGKey(1), (3, 5, 7),
                                 dtype=jnp.float32)
    out2 = jax.block_until_ready(my_activation(x2))
    assert jnp.allclose(out2, _reference(x2), atol=1e-6, rtol=1e-6)

    print("KERNEL_OK")
</pallas_src>

<mosaic_0001>
module attributes {stable_mosaic.version = 11 : i64} {
  func.func @_my_activation_kernel(%arg0: memref<16x128xf32, #tpu.memory_space<vmem>>, %arg1: memref<16x128xf32, #tpu.memory_space<vmem>>) attributes {dimension_semantics = [], scalar_prefetch = 0 : i64, scratch_operands = 0 : i64, tpu.core_type = #tpu.core_type<tc>} {
    %c0 = arith.constant 0 : index
    %c0_0 = arith.constant 0 : index
    %0 = vector.load %arg0[%c0, %c0_0] : memref<16x128xf32, #tpu.memory_space<vmem>>, vector<16x128xf32>
    %1 = arith.mulf %0, %0 : vector<16x128xf32>
    %cst = arith.constant 5.000000e-01 : f32
    %2 = vector.broadcast %cst : f32 to vector<16x128xf32>
    %3 = arith.mulf %2, %1 : vector<16x128xf32>
    %4 = arith.subf %0, %3 : vector<16x128xf32>
    %cst_1 = arith.constant 1.250000e-01 : f32
    %5 = vector.broadcast %cst_1 : f32 to vector<16x128xf32>
    %6 = arith.mulf %5, %1 : vector<16x128xf32>
    %cst_2 = arith.constant 5.000000e-01 : f32
    %7 = vector.broadcast %cst_2 : f32 to vector<16x128xf32>
    %8 = arith.addf %6, %7 : vector<16x128xf32>
    %cst_3 = arith.constant 0.000000e+00 : f32
    %9 = vector.broadcast %cst_3 : f32 to vector<16x128xf32>
    %10 = arith.cmpf olt, %0, %9 : vector<16x128xf32>
    %cst_4 = arith.constant 1.000000e+00 : f32
    %11 = vector.broadcast %cst_4 : f32 to vector<16x128xf32>
    %12 = arith.cmpf ogt, %0, %11 : vector<16x128xf32>
    %13 = arith.select %12, %8, %0 : vector<16x128xi1>, vector<16x128xf32>
    %14 = arith.select %10, %4, %13 : vector<16x128xi1>, vector<16x128xf32>
    %c0_5 = arith.constant 0 : index
    %c0_6 = arith.constant 0 : index
    %15 = vector.load %arg1[%c0_5, %c0_6] : memref<16x128xf32, #tpu.memory_space<vmem>>, vector<16x128xf32>
    tpu.vector_store %arg1[%c0_5, %c0_6], %14 {strides = array<i32>} : memref<16x128xf32, #tpu.memory_space<vmem>>, vector<16x128xf32>,
    return
  }
}

</mosaic_0001>

<bundles_post_ra>
// kernel: tpu_custom_call.1
= control target key start
LH: loop header
LB: loop body
LE: loop exit
PB: predicated region body
PF: predicated region fallthrough
CT: control target
= control target key end

     0   :  { %6 = vsyncpa [#allocation3], 0  ;;  %s158_s0 = inlined_call_operand.hbm [shape: f32[16,128], index: 0, kind: input, shape index: {}]   ;;  %s159_s1 = inlined_call_operand.hbm [shape: f32[16,128], index: 1, kind: output, shape index: {}]  }
   0x1   :  { %7 = vsyncpa [#allocation4], 0  ;;  %s114_s6 = smov [#allocation2]   ;;  %s66_s10 = scalar_lea.hbm %s158_s0, 256 }
   0x2   :  { %s13_s7 = sshll.u32 %s114_s6, 4  ;;  %p67_p0 = scmp.ne.s32.totalorder %s158_s0, %s66_s10  ;;  %s14_s7 = int_to_ptr.vmem [resolvable:$true] %s13_s7 }
   0x3   :  { %p70_p1 = scmp.lt.u32.totalorder %s66_s10, %s158_s0 }
   0x5   :  { %p72_p2 = pnand %p70_p1, %p67_p0 }
   0x7   :  { %75 = shalt.err (!%p72_p2)
}
   0x8   :  { %s76_s15 = scalar_lea.vmem %s14_s7, 256  ;;  %p81_p4 = scmp.lt.s32.totalorder %s14_s7, %s14_s7 }
   0x9   :  { %p77_p3 = scmp.ne.s32.totalorder %s14_s7, %s76_s15  ;;  %p82_p5 = scmp.lt.s32.totalorder %s76_s15, %s76_s15 }
   0xb   :  { %p83_p6 = por %p82_p5, %p81_p4 }
   0xd   :  { %p84_p7 = pnand %p83_p6, %p77_p3 }
   0xf   :  { %87 = shalt.err (!%p84_p7)
}
  0x10   :  { %s115_s16 = smov 128   ;;  %s116_s17 = smov 8  }
  0x11   :  { %19 = dma.hbm_to_vmem [thread:$0]  %s158_s0, 256, %s14_s7, [#allocation3], %s115_s16, %s115_s16, %s116_s17  }
  0x12   :  { %110 = dma.done.wait [#allocation3], 256  }
  0x13   :  { %111 = vsyncadd [#allocation3], 4294967040  ;;  %v23_v0 = vld [vmem:[#allocation2] sm:$0xff]  ;;  %v24_v1 = vld [vmem:[#allocation2 + $0x8] sm:$0xff]  ;;  %s117_s20 = smov [#allocation5]  }
  0x14   :  { %v25_v2 = vmul.f32 %v23_v0, %v23_v0  ;;  %v26_v3 = vmul.f32 %v24_v1, %v24_v1  ;;  %vm35_vm0 = vcmp.lt.f32.partialorder %v23_v0, 0.0  ;;  %vm37_vm1 = vcmp.gt.f32.partialorder %v23_v0, 1.0  ;;  %s50_s21 = sshll.u32 %s117_s20, 4  ;;  %s51_s21 = int_to_ptr.vmem [resolvable:$true] %s50_s21 }
  0x15   :  { %vm36_vm2 = vcmp.lt.f32.partialorder %v24_v1, 0.0  ;;  %vm38_vm3 = vcmp.gt.f32.partialorder %v24_v1, 1.0  ;;  %s88_s0 = scalar_lea.vmem %s51_s21, 256  ;;  %p93_p9 = scmp.lt.s32.totalorder %s51_s21, %s51_s21 }
  0x16   :  { %v27_v4 = vmul.f32 0.5, %v25_v2  ;;  %v31_v5 = vmul.f32 0.125, %v25_v2  ;;  %v28_v6 = vmul.f32 0.5, %v26_v3  ;;  %v32_v7 = vmul.f32 0.125, %v26_v3  ;;  %p89_p8 = scmp.ne.s32.totalorder %s51_s21, %s88_s0  ;;  %p94_p10 = scmp.lt.s32.totalorder %s88_s0, %s88_s0 }
  0x18   :  { %v29_v8 = vsub.f32 %v23_v0, %v27_v4  ;;  %v33_v9 = vadd.f32 0.5, %v31_v5  ;;  %v30_v10 = vsub.f32 %v24_v1, %v28_v6  ;;  %v34_v11 = vadd.f32 0.5, %v32_v7  ;;  %p95_p11 = por %p94_p10, %p93_p9 }
  0x1a   :  { %v39_v12 = vsel %vm37_vm1, %v33_v9, %v23_v0  ;;  %v40_v13 = vsel %vm38_vm3, %v34_v11, %v24_v1  ;;  %p96_p12 = pnand %p95_p11, %p89_p8 }
  0x1b   :  { %v41_v14 = vsel %vm35_vm0, %v29_v8, %v39_v12  ;;  %v42_v15 = vsel %vm36_vm2, %v30_v10, %v40_v13 }
  0x1c   :  { %43 = vst [vmem:[#allocation5] sm:$0xff] %v41_v14  ;;  %44 = vst [vmem:[#allocation5 + $0x8] sm:$0xff] %v42_v15 }
  0x1d   :  { %99 = shalt.err (!%p96_p12)
}
  0x1e   :  { %s100_s24 = scalar_lea.hbm %s159_s1, 256 }
  0x1f   :  { %p101_p13 = scmp.ne.s32.totalorder %s159_s1, %s100_s24  ;;  %p104_p0 = scmp.lt.u32.totalorder %s100_s24, %s159_s1 }
  0x21   :  { %p106_p1 = pnand %p104_p0, %p101_p13 }
  0x23   :  { %109 = shalt.err (!%p106_p1)
}
  0x24   :  { %56 = dma.vmem_to_hbm [thread:$0]  %s51_s21, 256, %s159_s1, [#allocation4], %s115_s16, %s115_s16, %s116_s17  }
  0x25   :  { %112 = dma.done.wait [#allocation4], 256  }
  0x26   :  { %113 = vsyncadd [#allocation4], 4294967040 }
  0x27   :  { %60 = vsyncpa [#allocation3], 1 }
  0x28   :  { %61 = vsyncpa [#allocation4], 1 }

</bundles_post_ra>
